<compile_context>
chip_gen: v6e
topology: v6e:2x2x1
jax: 0.10.0
libtpu: 0.0.40
codegen_flags: <defaults>
</compile_context>

<pallas_src>
import jax
import jax.numpy as jnp
from jax.experimental import pallas as pl
from jax.experimental.pallas import tpu as pltpu


def _reg_weighted_l1_kernel(mask_ref,   # VMEM [B, C, K]  f32   (resident, constant block)
                            tgt_ref,    # VMEM [B, C, K]  f32   (resident, constant block)
                            ind_ref,    # VMEM [B, K]     i32   (resident, constant block)
                            feat_ref,   # VMEM [1, C, HW] native dtype (streamed per batch)
                            out_ref):   # VMEM [1, 1, 2]  f32   partial sums for this batch
    b = pl.program_id(0)
    HW = feat_ref.shape[-1]
    K = ind_ref.shape[-1]

    # ---- on-chip gather via one-hot matmul (MXU) ---------------------------
    # pred[c, k] = feat[c, ind[b, k]]
    feat = feat_ref[0]                                     # [C, HW], native dtype
    idx_row = ind_ref[pl.ds(b, 1), :]                      # [1, K] int32
    hw_iota = jax.lax.broadcasted_iota(jnp.int32, (HW, K), 0)          # [HW, K]
    onehot = (hw_iota == jnp.broadcast_to(idx_row, (HW, K))).astype(feat.dtype)
    pred = jnp.dot(feat, onehot, preferred_element_type=jnp.float32)   # [C, K] f32

    # ---- masked L1 partial sums for this batch (VPU + one XLU reduce) ------
    m = mask_ref[b].astype(jnp.float32)                    # [C, K]
    t = tgt_ref[b].astype(jnp.float32)                     # [C, K]
    diff = jnp.abs(pred * m - t * m)                       # [C, K]

    abs_sum = jnp.sum(diff, keepdims=True)                 # (1, 1)
    m_sum = jnp.sum(m, keepdims=True)                      # (1, 1)

    # Pack [abs_sum, mask_sum] into the (1, 1, 2) output block.
    lane = jax.lax.broadcasted_iota(jnp.int32, (1, 2), 1)
    packed = jnp.where(lane == 0, abs_sum, m_sum)          # (1, 2)
    out_ref[...] = packed.reshape(1, 1, 2)


@jax.jit
def reg_weighted_l1_loss(output, mask, ind, target):
    """JAX/Pallas equivalent of RegWeightedL1Loss.forward.

    output : [B, C, H, W] float   (NCHW conv head output)
    mask   : [B, K, C]    0/1 weights
    ind    : [B, K]       int, flattened spatial indices into H*W
    target : [B, K, C]    float
    returns: scalar float32 loss
    """
    B, C, H, W = output.shape
    K = ind.shape[1]
    HW = H * W

    feat = output.reshape(B, C, HW)                               # pure view, native dtype
    mask_t = jnp.transpose(mask.astype(jnp.float32), (0, 2, 1))   # [B, C, K]  (tiny)
    tgt_t = jnp.transpose(target.astype(jnp.float32), (0, 2, 1))  # [B, C, K]  (tiny)
    ind_i = ind.astype(jnp.int32)                                 # [B, K]

    feat_bytes = jnp.dtype(output.dtype).itemsize
    cost = pl.CostEstimate(
        flops=int(B * (2 * C * HW * K + 6 * C * K)),
        transcendentals=0,
        bytes_accessed=int(B * C * HW * feat_bytes        # streamed feature map
                           + 2 * B * C * K * 4            # mask + target
                           + B * K * 4                    # ind
                           + B * 2 * 4),                  # partial sums out
    )

    partial = pl.pallas_call(
        _reg_weighted_l1_kernel,
        out_shape=jax.ShapeDtypeStruct((B, 1, 2), jnp.float32),
        grid=(B,),
        in_specs=[
            # Tiny arrays: full-array blocks, constant index_map -> one DMA, resident.
            pl.BlockSpec((B, C, K), lambda b: (0, 0, 0)),     # mask_t
            pl.BlockSpec((B, C, K), lambda b: (0, 0, 0)),     # tgt_t
            pl.BlockSpec((B, K), lambda b: (0, 0)),           # ind
            # Feature map: one contiguous block per batch, auto double-buffered.
            pl.BlockSpec((1, C, HW), lambda b: (b, 0, 0)),    # feat
        ],
        out_specs=pl.BlockSpec((1, 1, 2), lambda b: (b, 0, 0)),
        compiler_params=pltpu.CompilerParams(
            dimension_semantics=("parallel",),    # independent per-batch partial sums
        ),
        cost_estimate=cost,
    )(mask_t, tgt_t, ind_i, feat)

    partial = partial.reshape(B, 2)
    abs_sum = jnp.sum(partial[:, 0])
    m_sum = jnp.sum(partial[:, 1])
    return abs_sum / (m_sum + 1e-4)


def _reference(output, mask, ind, target):
    """Pure-JAX reference matching the PyTorch module."""
    B, C, H, W = output.shape
    feat = jnp.transpose(output, (0, 2, 3, 1)).reshape(B, H * W, C)
    pred = jnp.take_along_axis(feat, ind[:, :, None].astype(jnp.int32), axis=1)
    m = mask.astype(jnp.float32)
    loss = jnp.sum(jnp.abs(pred * m - target * m))
    return loss / (jnp.sum(m) + 1e-4)


if __name__ == "__main__":
    key = jax.random.PRNGKey(0)
    kx, km, ki, kt = jax.random.split(key, 4)

    B, C, H, W, K = 2, 4, 16, 16, 8

    output = jax.random.normal(kx, (B, C, H, W), dtype=jnp.float32)
    mask = (jax.random.uniform(km, (B, K, C)) > 0.3).astype(jnp.float32)
    ind = jax.random.randint(ki, (B, K), 0, H * W, dtype=jnp.int32)
    target = jax.random.normal(kt, (B, K, C), dtype=jnp.float32)

    loss = reg_weighted_l1_loss(output, mask, ind, target)
    jax.block_until_ready(loss)

    ref = _reference(output, mask, ind, target)
    assert jnp.isfinite(loss), loss
    assert jnp.allclose(loss, ref, rtol=1e-4, atol=1e-5), (loss, ref)
    print("KERNEL_OK")
</pallas_src>

<mosaic_0001>
module attributes {stable_mosaic.version = 11 : i64} {
  func.func @_reg_weighted_l1_kernel(%arg0: i32, %arg1: memref<2x4x8xf32, #tpu.memory_space<vmem>>, %arg2: memref<2x4x8xf32, #tpu.memory_space<vmem>>, %arg3: memref<2x8xi32, #tpu.memory_space<vmem>>, %arg4: memref<1x4x256xf32, #tpu.memory_space<vmem>>, %arg5: memref<1x1x2xf32, #tpu.memory_space<vmem>>) attributes {dimension_semantics = [#tpu.dimension_semantics<parallel>], iteration_bounds = array<i64: 2>, scalar_prefetch = 0 : i64, scratch_operands = 0 : i64, tpu.core_type = #tpu.core_type<tc>, window_params = [{pipeline_mode = #tpu.pipeline_mode<synchronous>, transform_indices = @transform_0, window_bounds = array<i64: 2, 4, 8>}, {pipeline_mode = #tpu.pipeline_mode<synchronous>, transform_indices = @transform_1, window_bounds = array<i64: 2, 4, 8>}, {pipeline_mode = #tpu.pipeline_mode<synchronous>, transform_indices = @transform_2, window_bounds = array<i64: 2, 8>}, {transform_indices = @transform_3, window_bounds = array<i64: 1, 4, 256>}, {transform_indices = @transform_4, window_bounds = array<i64: 1, 1, 2>}]} {
    %c0 = arith.constant 0 : index
    %c0_0 = arith.constant 0 : index
    %c0_1 = arith.constant 0 : index
    %0 = vector.load %arg4[%c0, %c0_0, %c0_1] : memref<1x4x256xf32, #tpu.memory_space<vmem>>, vector<1x4x256xf32>
    %1 = vector.shape_cast %0 : vector<1x4x256xf32> to vector<4x256xf32>
    %2 = arith.index_cast %arg0 : i32 to index
    %c0_2 = arith.constant 0 : index
    %3 = vector.load %arg3[%2, %c0_2] : memref<2x8xi32, #tpu.memory_space<vmem>>, vector<1x8xi32>
    %4 = tpu.iota {dimensions = array<i32: 0>} : vector<256x8xi32>
    %5 = vector.shape_cast %3 : vector<1x8xi32> to vector<1x8xi32>
    %6 = vector.broadcast %5 : vector<1x8xi32> to vector<256x8xi32>
    %7 = arith.cmpi eq, %4, %6 : vector<256x8xi32>
    %8 = arith.extui %7 : vector<256x8xi1> to vector<256x8xi32>
    %9 = arith.sitofp %8 : vector<256x8xi32> to vector<256x8xf32>
    %cst = arith.constant dense<0.000000e+00> : vector<4x8xf32>
    %10 = tpu.matmul %1, %9, %cst {dimension_numbers = #tpu.dot_dimension_numbers<[1], [0], [0], [1], [0, 0, 1, 1], [], []>} : vector<4x256xf32>, vector<256x8xf32>, vector<4x8xf32> -> vector<4x8xf32>
    %11 = arith.index_cast %arg0 : i32 to index
    %c0_3 = arith.constant 0 : index
    %c0_4 = arith.constant 0 : index
    %12 = vector.load %arg1[%11, %c0_3, %c0_4] : memref<2x4x8xf32, #tpu.memory_space<vmem>>, vector<1x4x8xf32>
    %13 = vector.shape_cast %12 : vector<1x4x8xf32> to vector<4x8xf32>
    %14 = arith.index_cast %arg0 : i32 to index
    %c0_5 = arith.constant 0 : index
    %c0_6 = arith.constant 0 : index
    %15 = vector.load %arg2[%14, %c0_5, %c0_6] : memref<2x4x8xf32, #tpu.memory_space<vmem>>, vector<1x4x8xf32>
    %16 = vector.shape_cast %15 : vector<1x4x8xf32> to vector<4x8xf32>
    %17 = arith.mulf %10, %13 : vector<4x8xf32>
    %18 = arith.mulf %16, %13 : vector<4x8xf32>
    %19 = arith.subf %17, %18 : vector<4x8xf32>
    %20 = math.absf %19 : vector<4x8xf32>
    %21 = vector.shape_cast %20 : vector<4x8xf32> to vector<1x4x8xf32>
    %cst_7 = arith.constant dense<0.000000e+00> : vector<1xf32>
    %22 = vector.multi_reduction <add>, %21, %cst_7 [1, 2] : vector<1x4x8xf32> to vector<1xf32>
    %23 = vector.shape_cast %22 : vector<1xf32> to vector<1x1x1xf32>
    %24 = vector.extract %23[0, 0, 0] : f32 from vector<1x1x1xf32>
    %25 = vector.broadcast %24 : f32 to vector<1x1xf32>
    %26 = vector.shape_cast %13 : vector<4x8xf32> to vector<1x4x8xf32>
    %cst_8 = arith.constant dense<0.000000e+00> : vector<1xf32>
    %27 = vector.multi_reduction <add>, %26, %cst_8 [1, 2] : vector<1x4x8xf32> to vector<1xf32>
    %28 = vector.shape_cast %27 : vector<1xf32> to vector<1x1x1xf32>
    %29 = vector.extract %28[0, 0, 0] : f32 from vector<1x1x1xf32>
    %30 = vector.broadcast %29 : f32 to vector<1x1xf32>
    %31 = tpu.iota {dimensions = array<i32: 1>} : vector<1x2xi32>
    %c0_i32 = arith.constant 0 : i32
    %32 = vector.broadcast %c0_i32 : i32 to vector<1x2xi32>
    %33 = arith.cmpi eq, %31, %32 : vector<1x2xi32>
    %34 = vector.shape_cast %25 : vector<1x1xf32> to vector<1x1xf32>
    %35 = vector.broadcast %34 : vector<1x1xf32> to vector<1x2xf32>
    %36 = vector.shape_cast %30 : vector<1x1xf32> to vector<1x1xf32>
    %37 = vector.broadcast %36 : vector<1x1xf32> to vector<1x2xf32>
    %38 = arith.select %33, %35, %37 : vector<1x2xi1>, vector<1x2xf32>
    %39 = vector.shape_cast %38 : vector<1x2xf32> to vector<1x1x2xf32>
    %c0_9 = arith.constant 0 : index
    %c0_10 = arith.constant 0 : index
    %c0_11 = arith.constant 0 : index
    %40 = vector.load %arg5[%c0_9, %c0_10, %c0_11] : memref<1x1x2xf32, #tpu.memory_space<vmem>>, vector<1x1x2xf32>
    tpu.vector_store %arg5[%c0_9, %c0_10, %c0_11], %39 {strides = array<i32>} : memref<1x1x2xf32, #tpu.memory_space<vmem>>, vector<1x1x2xf32>,
    return
  }
  func.func @transform_0(%arg0: i32) -> (i32, i32, i32) {
    %c0_i32 = arith.constant 0 : i32
    %c0_i32_0 = arith.constant 0 : i32
    %c0_i32_1 = arith.constant 0 : i32
    %c0_i32_2 = arith.constant 0 : i32
    return %c0_i32, %c0_i32_0, %c0_i32_1 : i32, i32, i32
  }
  func.func @transform_1(%arg0: i32) -> (i32, i32, i32) {
    %c0_i32 = arith.constant 0 : i32
    %c0_i32_0 = arith.constant 0 : i32
    %c0_i32_1 = arith.constant 0 : i32
    %c0_i32_2 = arith.constant 0 : i32
    return %c0_i32, %c0_i32_0, %c0_i32_1 : i32, i32, i32
  }
  func.func @transform_2(%arg0: i32) -> (i32, i32) {
    %c0_i32 = arith.constant 0 : i32
    %c0_i32_0 = arith.constant 0 : i32
    %c0_i32_1 = arith.constant 0 : i32
    return %c0_i32, %c0_i32_0 : i32, i32
  }
  func.func @transform_3(%arg0: i32) -> (i32, i32, i32) {
    %c0_i32 = arith.constant 0 : i32
    %c0_i32_0 = arith.constant 0 : i32
    %c0_i32_1 = arith.constant 0 : i32
    return %arg0, %c0_i32, %c0_i32_0 : i32, i32, i32
  }
  func.func @transform_4(%arg0: i32) -> (i32, i32, i32) {
    %c0_i32 = arith.constant 0 : i32
    %c0_i32_0 = arith.constant 0 : i32
    %c0_i32_1 = arith.constant 0 : i32
    return %arg0, %c0_i32, %c0_i32_0 : i32, i32, i32
  }
}

</mosaic_0001>

<bundles_post_ra>
// kernel: reg_weighted_l1_loss.1
= control target key start
LH: loop header
LB: loop body
LE: loop exit
PB: predicated region body
PF: predicated region fallthrough
CT: control target
= control target key end

     0   :  { %s652_s15 = smov 0   ;;  %s790_s0 = inlined_call_operand.vmem [shape: f32[2,4,8], index: 0, kind: input, shape index: {}]   ;;  %s791_s1 = inlined_call_operand.vmem [shape: f32[2,4,8], index: 1, kind: input, shape index: {}]   ;;  %s792_s2 = inlined_call_operand.vmem [shape: s32[2,8], index: 2, kind: input, shape index: {}]   ;;  %s793_s3 = inlined_call_operand.vmem [shape: f32[2,4,256], index: 3, kind: input, shape index: {}]   ;;  %s794_s4 = inlined_call_operand.vmem [shape: f32[2,1,2], index: 4, kind: output, shape index: {}]  }
   0x1 LB: > { %s658_s16 = sadd.s32 4294967295, %s624_s15   ;;  %p497_p0 = scmp.ge.s32.totalorder %s624_s15, 1  ;;  %s624_s15 = sphi %s652_s15, %s14_s15  }
   0x2   : > { %p162_p1 = scmp.lt.s32.totalorder %s624_s15, 3 }
   0x4   : > { %p163_p2 = pnand %p497_p0, %p162_p1 }
   0x5   : > { %s195_s19 = scalar_lea.vmem (!%p163_p2), %s792_s2, %s658_s16  ;;  %p186_p3 = scmp.lt.s32.totalorder (!%p163_p2), %s658_s16, 1 }
   0x6   : > { %166 = sbr.rel (%p163_p2) target bundleno = 461 (0x1cd), region = 36  ;;  %s565_s25 = sshll.u32 (!%p163_p2), %s658_s16, 2 }
   0x7   : > { %s404_s28 = scalar_lea.vmem (!%p163_p2), %s790_s0, %s565_s25  ;;  %s406_s5 = scalar_lea.vmem (!%p163_p2), %s791_s1, %s565_s25 }
   0xb   : > { %v197_v0 = vlaneseq  ;;  %v670_v2 = vld [vmem:[%s195_s19] ss:$0 sm:$0xff]  ;;  %s683_s20 = scalar_select %p186_p3, %s658_s16, 1  ;;  %v626_v10 = vmov 1.0  }
   0xc   : > { %v405_v38 = vld [vmem:[%s404_s28] sm:$0xf] }
   0xd   : > { %v667_v1 = vshrl.u32 %v197_v0, 7  ;;  %s568_s21 = sshll.u32 %s683_s20, 3  ;;  %v407_v39 = vld [vmem:[%s406_s5] sm:$0xf]  ;;  %v434_v62 = vand.u32 127, %v197_v0  ;;  %s193_s9 = scalar_lea.vmem %s794_s4, %s683_s20 }
   0xe   : > { %s190_s24 = scalar_lea.vmem %s793_s3, %s568_s21  ;;  %v409_v42 = vmul.f32 %v407_v39, %v405_v38 }
   0xf   : > { %v229_v3 = vadd.s32 248, %v667_v1  ;;  %v213_v4 = vadd.s32 120, %v667_v1  ;;  %v228_v5 = vadd.s32 240, %v667_v1  ;;  %v212_v6 = vadd.s32 112, %v667_v1  ;;  %v194_v21 = vld [vmem:[%s190_s24] sm:$0xff] }
  0x10   : > { %v227_v7 = vadd.s32 232, %v667_v1  ;;  %v211_v8 = vadd.s32 104, %v667_v1  ;;  %v226_v9 = vadd.s32 224, %v667_v1  ;;  %v210_v11 = vadd.s32 96, %v667_v1 }
  0x11   : > { %vm265_vm0 = vcmp.eq.s32.totalorder %v229_v3, %v670_v2  ;;  %vm249_vm1 = vcmp.eq.s32.totalorder %v213_v4, %v670_v2  ;;  %vm264_vm2 = vcmp.eq.s32.totalorder %v228_v5, %v670_v2  ;;  %vm248_vm3 = vcmp.eq.s32.totalorder %v212_v6, %v670_v2 }
  0x12   : > { %569 = vmatprep.subr.msk.mxu0 %vm265_vm0, %v626_v10  ;;  %vm263_vm4 = vcmp.eq.s32.totalorder %v227_v7, %v670_v2  ;;  %v225_v12 = vadd.s32 216, %v667_v1  ;;  %vm247_vm5 = vcmp.eq.s32.totalorder %v211_v8, %v670_v2  ;;  %v209_v13 = vadd.s32 88, %v667_v1 }
  0x13   : > { %570 = vmatpush3.msk.msra.mxu0 %vm249_vm1, %v626_v10  ;;  %vm262_vm6 = vcmp.eq.s32.totalorder %v226_v9, %v670_v2  ;;  %v224_v14 = vadd.s32 208, %v667_v1  ;;  %vm246_vm7 = vcmp.eq.s32.totalorder %v210_v11, %v670_v2  ;;  %v208_v15 = vadd.s32 80, %v667_v1 }
  0x14   : > { %571 = vmatprep.subr.msk.mxu0 %vm264_vm2, %v626_v10  ;;  %vm261_vm8 = vcmp.eq.s32.totalorder %v225_v12, %v670_v2  ;;  %v223_v16 = vadd.s32 200, %v667_v1  ;;  %vm245_vm9 = vcmp.eq.s32.totalorder %v209_v13, %v670_v2  ;;  %v207_v17 = vadd.s32 72, %v667_v1 }
  0x15   : > { %572 = vmatpush3.msk.msra.mxu0 %vm248_vm3, %v626_v10  ;;  %vm260_vm10 = vcmp.eq.s32.totalorder %v224_v14, %v670_v2  ;;  %v222_v18 = vadd.s32 192, %v667_v1  ;;  %vm244_vm11 = vcmp.eq.s32.totalorder %v208_v15, %v670_v2  ;;  %v206_v19 = vadd.s32 64, %v667_v1 }
  0x16   : > { %573 = vmatprep.subr.msk.mxu0 %vm263_vm4, %v626_v10  ;;  %vm259_vm12 = vcmp.eq.s32.totalorder %v223_v16, %v670_v2  ;;  %v221_v20 = vadd.s32 184, %v667_v1  ;;  %vm243_vm13 = vcmp.eq.s32.totalorder %v207_v17, %v670_v2  ;;  %v205_v22 = vadd.s32 56, %v667_v1 }
  0x17   : > { %574 = vmatpush3.msk.msra.mxu0 %vm247_vm5, %v626_v10  ;;  %vm258_vm14 = vcmp.eq.s32.totalorder %v222_v18, %v670_v2  ;;  %v220_v23 = vadd.s32 176, %v667_v1  ;;  %vm242_vm15 = vcmp.eq.s32.totalorder %v206_v19, %v670_v2  ;;  %v204_v24 = vadd.s32 48, %v667_v1 }
  0x18   : > { %575 = vmatprep.subr.msk.mxu0 %vm262_vm6, %v626_v10  ;;  %v331_v25 = vcombine.high %v194_v21, %v194_v21  ;;  %vm257_vm0 = vcmp.eq.s32.totalorder %v221_v20, %v670_v2  ;;  %v219_v26 = vadd.s32 168, %v667_v1  ;;  %vm241_vm1 = vcmp.eq.s32.totalorder %v205_v22, %v670_v2 }
  0x19   : > { %576 = vmatpush3.msk.msra.mxu0 %vm246_vm7, %v626_v10  ;;  %v203_v27 = vadd.s32 40, %v667_v1  ;;  %vm256_vm2 = vcmp.eq.s32.totalorder %v220_v23, %v670_v2  ;;  %v218_v28 = vadd.s32 160, %v667_v1  ;;  %vm240_vm3 = vcmp.eq.s32.totalorder %v204_v24, %v670_v2 }
  0x1a   : > { %577 = vmatprep.subr.msk.mxu0 %vm261_vm8, %v626_v10  ;;  %397 = vmatprep.mubr.f32.mxu0 %v331_v25  ;;  %v202_v29 = vadd.s32 32, %v667_v1  ;;  %vm255_vm4 = vcmp.eq.s32.totalorder %v219_v26, %v670_v2  ;;  %v217_v30 = vadd.s32 152, %v667_v1  ;;  %v201_v31 = vadd.s32 24, %v667_v1 }
  0x1b   : > { %578 = vmatpush3.msk.msra.mxu0 %vm245_vm9, %v626_v10  ;;  %vm239_vm5 = vcmp.eq.s32.totalorder %v203_v27, %v670_v2  ;;  %vm254_vm6 = vcmp.eq.s32.totalorder %v218_v28, %v670_v2  ;;  %v216_v32 = vadd.s32 144, %v667_v1  ;;  %v200_v33 = vadd.s32 16, %v667_v1 }
  0x1c   : > { %579 = vmatprep.subr.msk.mxu0 %vm260_vm10, %v626_v10  ;;  %vm238_vm7 = vcmp.eq.s32.totalorder %v202_v29, %v670_v2  ;;  %vm253_vm8 = vcmp.eq.s32.totalorder %v217_v30, %v670_v2  ;;  %v215_v34 = vadd.s32 136, %v667_v1  ;;  %vm237_vm9 = vcmp.eq.s32.totalorder %v201_v31, %v670_v2 }
  0x1d   : > { %580 = vmatpush3.msk.msra.mxu0 %vm244_vm11, %v626_v10  ;;  %v199_v35 = vadd.s32 8, %v667_v1  ;;  %vm252_vm10 = vcmp.eq.s32.totalorder %v216_v32, %v670_v2  ;;  %v214_v36 = vadd.s32 128, %v667_v1  ;;  %vm236_vm11 = vcmp.eq.s32.totalorder %v200_v33, %v670_v2 }
  0x1e   : > { %581 = vmatprep.subr.msk.mxu0 %vm259_vm12, %v626_v10  ;;  %vm251_vm12 = vcmp.eq.s32.totalorder %v215_v34, %v670_v2 }
  0x1f   : > { %582 = vmatpush3.msk.msra.mxu0 %vm243_vm13, %v626_v10  ;;  %vm235_vm13 = vcmp.eq.s32.totalorder %v199_v35, %v670_v2 }
  0x20   : > { %583 = vmatprep.subr.msk.mxu0 %vm258_vm14, %v626_v10  ;;  %vm250_vm14 = vcmp.eq.s32.totalorder %v214_v36, %v670_v2 }
  0x21   : > { %584 = vmatpush3.msk.msra.mxu0 %vm242_vm15, %v626_v10  ;;  %vm234_vm15 = vcmp.eq.s32.totalorder %v667_v1, %v670_v2 }
  0x22   : > { %585 = vmatprep.subr.msk.mxu0 %vm257_vm0, %v626_v10  ;;  %vm412_vm0 = vcmask 60416  }
  0x23   : > { %586 = vmatpush3.msk.msra.mxu0 %vm241_vm1, %v626_v10  ;;  %v423_v47 = vsel %vm412_vm0, %v405_v38, 0.0  ;;  %vm435_vm1 = vcmp.eq.s32.totalorder %v434_v62, 0 }
  0x24   : > { %587 = vmatprep.subr.msk.mxu0 %vm256_vm2, %v626_v10  ;;  %vm439_vm2 = vcmask 8192  }
  0x25   : > { %588 = vmatpush3.msk.msra.mxu0 %vm240_vm3, %v626_v10 }
  0x26   : > { %589 = vmatprep.subr.msk.mxu0 %vm255_vm4, %v626_v10 }
  0x27   : > { %590 = vmatpush3.msk.msra.mxu0 %vm239_vm5, %v626_v10 }
  0x28   : > { %591 = vmatprep.subr.msk.mxu0 %vm254_vm6, %v626_v10 }
  0x29   : > { %592 = vmatpush3.msk.msra.mxu0 %vm238_vm7, %v626_v10 }
  0x2a   : > { %593 = vmatprep.subr.msk.mxu0 %vm253_vm8, %v626_v10 }
  0x2b   : > { %594 = vmatpush3.msk.msra.mxu0 %vm237_vm9, %v626_v10 }
  0x2c   : > { %595 = vmatprep.subr.msk.mxu0 %vm252_vm10, %v626_v10 }
  0x2d   : > { %596 = vmatpush3.msk.msra.mxu0 %vm236_vm11, %v626_v10 }
  0x2e   : > { %597 = vmatprep.subr.msk.mxu0 %vm251_vm12, %v626_v10 }
  0x2f   : > { %598 = vmatpush3.msk.msra.mxu0 %vm235_vm13, %v626_v10 }
  0x30   : > { %599 = vmatprep.subr.msk.mxu0 %vm250_vm14, %v626_v10 }
  0x31   : > { %600 = vmatpush3.msk.msra.mxu0 %vm234_vm15, %v626_v10 }
  0x32   : > { %398 = vmatmul.mubr.f32.vlgmr.msra.gmra.mxu0 %v194_v21 }
  0xf2   : > { %v601_v37 = vpop.f32.mrf.mxu0 }
  0xf4   : > { %v602_v40 = vpop.f32.mrf.mxu0 }
  0xf5   : > { %v603_v41 = vadd.f32 %v602_v40, %v601_v37 }
  0xf7   : > { %v408_v43 = vmul.f32 %v603_v41, %v405_v38 }
  0xf9   : > { %v410_v44 = vsub.f32 %v408_v43, %v409_v42 }
  0xfb   : > { %v411_v45 = vand.u32 2147483647, %v410_v44 }
  0xfd   : > { %v413_v46 = vsel %vm412_vm0, %v411_v45, 0.0 }
  0xfe   : > { %414 = vadd.xlane.f32.xlu0 %v413_v46 }
 0x102   : > { %424 = vadd.xlane.f32.xlu0 %v423_v47 }
 0x187   : > { %v415_v48 = vpop.xlane.xlu0 %414 }
 0x188   : > { %v416_v49 = vrot.slane %v415_v48, 4 }
 0x18a   : > { %v417_v50 = vadd.f32 %v416_v49, %v415_v48 }
 0x18b   : > { %v425_v51 = vpop.xlane.xlu0 %424 }
 0x18c   : > { %v418_v52 = vrot.slane %v417_v50, 2  ;;  %v426_v53 = vrot.slane %v425_v51, 4 }
 0x18e   : > { %v427_v54 = vadd.f32 %v426_v53, %v425_v51  ;;  %v419_v55 = vadd.f32 %v418_v52, %v417_v50 }
 0x190   : > { %v428_v56 = vrot.slane %v427_v54, 2  ;;  %v420_v57 = vrot.slane %v419_v55, 1 }
 0x192   : > { %v429_v58 = vadd.f32 %v428_v56, %v427_v54  ;;  %v421_v59 = vadd.f32 %v420_v57, %v419_v55 }
 0x194   : > { %604 = vpush %v421_v59  ;;  %v430_v60 = vrot.slane %v429_v58, 1 }
 0x196   : > { %v431_v61 = vadd.f32 %v430_v60, %v429_v58 }
 0x198   : > { %606 = vpush %v431_v61 }
 0x1c5   : > { %s605_s6 = spop %604 }
 0x1c6   : > { %v436_v63 = vstv %s605_s6 }
 0x1c9   : > { %s607_s10 = spop %606 }
 0x1ca   : > { %v437_v1 = vstv %s607_s10 }
 0x1cb   : > { %v438_v2 = vsel %vm435_vm1, %v436_v63, %v437_v1 }
 0x1cc   : > { %440 = vst.msk [vmem:[%s193_s9] sm:$0x1] %vm439_vm2, %v438_v2 }
 0x1cd PF: > { %s14_s15 = sadd.s32 1, %s624_s15  }
 0x1ce   : > { %p11_p4 = scmp.ge.s32.totalorder %s14_s15, 4  }
 0x1d0   :  { %13 = sbr.rel (!%p11_p4) target bundleno = 1 (0x1), region = 69 }

</bundles_post_ra>
